<compile_context>
chip_gen: v7x
topology: tpu7x:2x2x1
jax: 0.10.0
libtpu: 0.0.40
codegen_flags: <defaults>
</compile_context>

<pallas_src>
import jax
import jax.numpy as jnp
from jax import lax
from jax.experimental import pallas as pl
from jax.experimental.pallas import tpu as pltpu

LANE = 128  # vreg lane width


def powernn_kernel(x_ref, w1_ref, b1_ref, w2_ref, b2_ref, w3_ref, b3_ref, o_ref):
    # x tile arrives batch-major (tb, in).  Contract both operands on the `in` axis
    # (q @ k^T form) so the batch lands on the MXU N / lane axis with no HBM-side
    # transpose of x.
    x = x_ref[...]                                               # (tb, in)  f32

    # Layer 1: (H, in) . (tb, in)^T -> (H, tb), f32 accumulate, then bias + ReLU.
    h1 = lax.dot_general(
        w1_ref[...], x,
        dimension_numbers=(((1,), (1,)), ((), ())),
        precision=lax.Precision.HIGHEST,
        preferred_element_type=jnp.float32)
    h1 = jnp.maximum(h1 + b1_ref[...], 0.0)                      # b1: (H,1) lane-bcast

    # Layer 2: (H, H) @ (H, tb) -> (H, tb).
    h2 = jnp.dot(w2_ref[...], h1,
                 precision=lax.Precision.HIGHEST,
                 preferred_element_type=jnp.float32)
    h2 = jnp.maximum(h2 + b2_ref[...], 0.0)

    # Layer 3: (1, H) @ (H, tb) -> (1, tb); reduction folded into the MXU and the
    # result is already a lane-dense row.
    out = jnp.dot(w3_ref[...], h2,
                  precision=lax.Precision.HIGHEST,
                  preferred_element_type=jnp.float32) + b3_ref[...]
    o_ref[...] = out.astype(o_ref.dtype)


def powernn_forward(x, params, *, tile_b=1024):
    """x: (B, in_features) float32. Returns (B, 1) float32."""
    w1, b1 = params["w1"], params["b1"]
    w2, b2 = params["w2"], params["b2"]
    w3, b3 = params["w3"], params["b3"]
    B, in_features = x.shape
    hidden = w1.shape[0]

    def round_up(v, m):
        return (v + m - 1) // m * m

    # Lane-aligned batch tile.  Large tiles amortize the per-grid-step overhead;
    # keep >=2 "parallel" steps when B allows so both TensorCores are used on v7x.
    tb = min(tile_b, round_up(B, LANE))
    if B >= 2 * LANE:
        tb = max(min(tb, round_up(-(-B // 2), LANE)), LANE)
    b_pad = round_up(B, tb)
    if b_pad != B:
        x = jnp.pad(x, ((0, b_pad - B), (0, 0)))
    grid = (b_pad // tb,)

    # Constant block index -> weights/biases loaded once, VMEM-resident across grid.
    def const_spec(a):
        return pl.BlockSpec(a.shape, lambda i: (0, 0))

    flops = 2 * b_pad * (in_features * hidden + hidden * hidden + hidden)
    weight_bytes = sum(int(a.size) * a.dtype.itemsize
                       for a in (w1, b1, w2, b2, w3, b3))
    bytes_accessed = b_pad * in_features * 4 + b_pad * 4 + weight_bytes

    out = pl.pallas_call(
        powernn_kernel,
        out_shape=jax.ShapeDtypeStruct((1, b_pad), jnp.float32),
        grid=grid,
        in_specs=[
            pl.BlockSpec((tb, in_features), lambda i: (i, 0)),   # x batch tile
            const_spec(w1), const_spec(b1),
            const_spec(w2), const_spec(b2),
            const_spec(w3), const_spec(b3),
        ],
        out_specs=pl.BlockSpec((1, tb), lambda i: (0, i)),       # lane-dense slab
        compiler_params=pltpu.CompilerParams(
            dimension_semantics=("parallel",)),
        cost_estimate=pl.CostEstimate(
            flops=flops, transcendentals=0, bytes_accessed=bytes_accessed),
    )(x, w1, b1, w2, b2, w3, b3)

    # (1, b_pad) lane-dense slab -> (B, 1); padded rows (non-zero through the biases)
    # are dropped by the slice before reshaping.
    return out[0, :B].reshape(B, 1)


def init_params(key, in_features=15, hidden=64, out=1):
    """Deterministic init mimicking nn.Linear's U(-1/sqrt(fan_in), 1/sqrt(fan_in))."""
    ks = jax.random.split(key, 6)

    def linear(kw, kb, fan_in, fan_out):
        bound = 1.0 / jnp.sqrt(jnp.float32(fan_in))
        w = jax.random.uniform(kw, (fan_out, fan_in), jnp.float32, -bound, bound)
        b = jax.random.uniform(kb, (fan_out,), jnp.float32, -bound, bound)
        return w, b

    w1, b1 = linear(ks[0], ks[1], in_features, hidden)
    w2, b2 = linear(ks[2], ks[3], hidden, hidden)
    w3, b3 = linear(ks[4], ks[5], hidden, out)        # w3: (1, hidden)

    # PyTorch (out, in) orientation, f32 weights; biases stored as columns so they
    # broadcast across the lane (batch) axis inside the kernel.
    return {
        "w1": w1, "b1": b1.reshape(hidden, 1),
        "w2": w2, "b2": b2.reshape(hidden, 1),
        "w3": w3, "b3": b3.reshape(out, 1),
    }


def powernn_ref(x, params):
    """Plain-JAX f32 reference (same math/orientation as the PyTorch module)."""
    hp = lax.Precision.HIGHEST
    h1 = jnp.maximum(jnp.dot(x, params["w1"].T, precision=hp) + params["b1"].T, 0.0)
    h2 = jnp.maximum(jnp.dot(h1, params["w2"].T, precision=hp) + params["b2"].T, 0.0)
    return jnp.dot(h2, params["w3"].T, precision=hp) + params["b3"].T


if __name__ == "__main__":
    in_features, hidden = 15, 64

    key = jax.random.PRNGKey(0)
    kx1, kx2, kp = jax.random.split(key, 3)
    params = init_params(kp, in_features, hidden)

    # Small batch (module-default shapes): single grid step.
    x_small = jax.random.normal(kx1, (8, in_features), jnp.float32)
    y_small = powernn_forward(x_small, params)
    jax.block_until_ready(y_small)
    assert y_small.shape == (8, 1)
    y_small_ref = powernn_ref(x_small, params)
    assert jnp.allclose(y_small, y_small_ref, atol=1e-3, rtol=1e-3), (
        float(jnp.max(jnp.abs(y_small - y_small_ref))))

    # Ragged larger batch: exercises zero-padding and the 2-step "parallel" grid.
    x_big = jax.random.normal(kx2, (300, in_features), jnp.float32)
    y_big = powernn_forward(x_big, params)
    jax.block_until_ready(y_big)
    assert y_big.shape == (300, 1)
    y_big_ref = powernn_ref(x_big, params)
    assert jnp.allclose(y_big, y_big_ref, atol=1e-3, rtol=1e-3), (
        float(jnp.max(jnp.abs(y_big - y_big_ref))))

    print("KERNEL_OK")
</pallas_src>

<mosaic_0001>
module attributes {stable_mosaic.version = 11 : i64} {
  func.func @powernn_kernel(%arg0: i32, %arg1: memref<128x15xf32, #tpu.memory_space<vmem>>, %arg2: memref<64x15xf32, #tpu.memory_space<vmem>>, %arg3: memref<64x1xf32, #tpu.memory_space<vmem>>, %arg4: memref<64x64xf32, #tpu.memory_space<vmem>>, %arg5: memref<64x1xf32, #tpu.memory_space<vmem>>, %arg6: memref<1x64xf32, #tpu.memory_space<vmem>>, %arg7: memref<1x1xf32, #tpu.memory_space<vmem>>, %arg8: memref<1x128xf32, #tpu.memory_space<vmem>>) attributes {dimension_semantics = [#tpu.dimension_semantics<parallel>], iteration_bounds = array<i64: 1>, scalar_prefetch = 0 : i64, scratch_operands = 0 : i64, tpu.core_type = #tpu.core_type<tc>, window_params = [{transform_indices = @transform_0, window_bounds = array<i64: 128, 15>}, {pipeline_mode = #tpu.pipeline_mode<synchronous>, transform_indices = @transform_1, window_bounds = array<i64: 64, 15>}, {pipeline_mode = #tpu.pipeline_mode<synchronous>, transform_indices = @transform_2, window_bounds = array<i64: 64, 1>}, {pipeline_mode = #tpu.pipeline_mode<synchronous>, transform_indices = @transform_3, window_bounds = array<i64: 64, 64>}, {pipeline_mode = #tpu.pipeline_mode<synchronous>, transform_indices = @transform_4, window_bounds = array<i64: 64, 1>}, {pipeline_mode = #tpu.pipeline_mode<synchronous>, transform_indices = @transform_5, window_bounds = array<i64: 1, 64>}, {pipeline_mode = #tpu.pipeline_mode<synchronous>, transform_indices = @transform_6, window_bounds = array<i64: 1, 1>}, {transform_indices = @transform_7, window_bounds = array<i64: 1, 128>}]} {
    %c0 = arith.constant 0 : index
    %c0_0 = arith.constant 0 : index
    %0 = vector.load %arg1[%c0, %c0_0] : memref<128x15xf32, #tpu.memory_space<vmem>>, vector<128x15xf32>
    %c0_1 = arith.constant 0 : index
    %c0_2 = arith.constant 0 : index
    %1 = vector.load %arg2[%c0_1, %c0_2] : memref<64x15xf32, #tpu.memory_space<vmem>>, vector<64x15xf32>
    %cst = arith.constant dense<0.000000e+00> : vector<64x128xf32>
    %2 = tpu.matmul %1, %0, %cst {dimension_numbers = #tpu.dot_dimension_numbers<[1], [1], [0], [0], [0, 0, 1, 0], [], []>, precision = #tpu.contract_precision<fp32>} : vector<64x15xf32>, vector<128x15xf32>, vector<64x128xf32> -> vector<64x128xf32>
    %c0_3 = arith.constant 0 : index
    %c0_4 = arith.constant 0 : index
    %3 = vector.load %arg3[%c0_3, %c0_4] : memref<64x1xf32, #tpu.memory_space<vmem>>, vector<64x1xf32>
    %4 = vector.broadcast %3 : vector<64x1xf32> to vector<64x128xf32>
    %5 = arith.addf %2, %4 : vector<64x128xf32>
    %cst_5 = arith.constant 0.000000e+00 : f32
    %6 = vector.broadcast %cst_5 : f32 to vector<64x128xf32>
    %7 = arith.maximumf %5, %6 : vector<64x128xf32>
    %c0_6 = arith.constant 0 : index
    %c0_7 = arith.constant 0 : index
    %8 = vector.load %arg4[%c0_6, %c0_7] : memref<64x64xf32, #tpu.memory_space<vmem>>, vector<64x64xf32>
    %cst_8 = arith.constant dense<0.000000e+00> : vector<64x128xf32>
    %9 = tpu.matmul %8, %7, %cst_8 {dimension_numbers = #tpu.dot_dimension_numbers<[1], [0], [0], [1], [0, 0, 1, 1], [], []>, precision = #tpu.contract_precision<fp32>} : vector<64x64xf32>, vector<64x128xf32>, vector<64x128xf32> -> vector<64x128xf32>
    %c0_9 = arith.constant 0 : index
    %c0_10 = arith.constant 0 : index
    %10 = vector.load %arg5[%c0_9, %c0_10] : memref<64x1xf32, #tpu.memory_space<vmem>>, vector<64x1xf32>
    %11 = vector.broadcast %10 : vector<64x1xf32> to vector<64x128xf32>
    %12 = arith.addf %9, %11 : vector<64x128xf32>
    %cst_11 = arith.constant 0.000000e+00 : f32
    %13 = vector.broadcast %cst_11 : f32 to vector<64x128xf32>
    %14 = arith.maximumf %12, %13 : vector<64x128xf32>
    %c0_12 = arith.constant 0 : index
    %c0_13 = arith.constant 0 : index
    %15 = vector.load %arg6[%c0_12, %c0_13] : memref<1x64xf32, #tpu.memory_space<vmem>>, vector<1x64xf32>
    %cst_14 = arith.constant dense<0.000000e+00> : vector<1x128xf32>
    %16 = tpu.matmul %15, %14, %cst_14 {dimension_numbers = #tpu.dot_dimension_numbers<[1], [0], [0], [1], [0, 0, 1, 1], [], []>, precision = #tpu.contract_precision<fp32>} : vector<1x64xf32>, vector<64x128xf32>, vector<1x128xf32> -> vector<1x128xf32>
    %c0_15 = arith.constant 0 : index
    %c0_16 = arith.constant 0 : index
    %17 = vector.load %arg7[%c0_15, %c0_16] : memref<1x1xf32, #tpu.memory_space<vmem>>, vector<1x1xf32>
    %18 = vector.broadcast %17 : vector<1x1xf32> to vector<1x128xf32>
    %19 = arith.addf %16, %18 : vector<1x128xf32>
    %c0_17 = arith.constant 0 : index
    %c0_18 = arith.constant 0 : index
    %20 = vector.load %arg8[%c0_17, %c0_18] : memref<1x128xf32, #tpu.memory_space<vmem>>, vector<1x128xf32>
    tpu.vector_store %arg8[%c0_17, %c0_18], %19 {strides = array<i32>} : memref<1x128xf32, #tpu.memory_space<vmem>>, vector<1x128xf32>,
    return
  }
  func.func @transform_0(%arg0: i32) -> (i32, i32) {
    %c0_i32 = arith.constant 0 : i32
    %c0_i32_0 = arith.constant 0 : i32
    return %arg0, %c0_i32 : i32, i32
  }
  func.func @transform_1(%arg0: i32) -> (i32, i32) {
    %c0_i32 = arith.constant 0 : i32
    %c0_i32_0 = arith.constant 0 : i32
    %c0_i32_1 = arith.constant 0 : i32
    return %c0_i32, %c0_i32_0 : i32, i32
  }
  func.func @transform_2(%arg0: i32) -> (i32, i32) {
    %c0_i32 = arith.constant 0 : i32
    %c0_i32_0 = arith.constant 0 : i32
    %c0_i32_1 = arith.constant 0 : i32
    return %c0_i32, %c0_i32_0 : i32, i32
  }
  func.func @transform_3(%arg0: i32) -> (i32, i32) {
    %c0_i32 = arith.constant 0 : i32
    %c0_i32_0 = arith.constant 0 : i32
    %c0_i32_1 = arith.constant 0 : i32
    return %c0_i32, %c0_i32_0 : i32, i32
  }
  func.func @transform_4(%arg0: i32) -> (i32, i32) {
    %c0_i32 = arith.constant 0 : i32
    %c0_i32_0 = arith.constant 0 : i32
    %c0_i32_1 = arith.constant 0 : i32
    return %c0_i32, %c0_i32_0 : i32, i32
  }
  func.func @transform_5(%arg0: i32) -> (i32, i32) {
    %c0_i32 = arith.constant 0 : i32
    %c0_i32_0 = arith.constant 0 : i32
    %c0_i32_1 = arith.constant 0 : i32
    return %c0_i32, %c0_i32_0 : i32, i32
  }
  func.func @transform_6(%arg0: i32) -> (i32, i32) {
    %c0_i32 = arith.constant 0 : i32
    %c0_i32_0 = arith.constant 0 : i32
    %c0_i32_1 = arith.constant 0 : i32
    return %c0_i32, %c0_i32_0 : i32, i32
  }
  func.func @transform_7(%arg0: i32) -> (i32, i32) {
    %c0_i32 = arith.constant 0 : i32
    %c0_i32_0 = arith.constant 0 : i32
    return %c0_i32, %arg0 : i32, i32
  }
}

</mosaic_0001>

<bundles_post_ra>
// kernel: tpu_custom_call.1
= control target key start
LH: loop header
LB: loop body
LE: loop exit
PB: predicated region body
PF: predicated region fallthrough
CT: control target
= control target key end

     0   :  { %s4842_s0 = inlined_call_operand.vmem [shape: f32[128,15], index: 0, kind: input, shape index: {}]   ;;  %s4843_s1 = inlined_call_operand.vmem [shape: f32[64,15], index: 1, kind: input, shape index: {}]   ;;  %s4844_s2 = inlined_call_operand.vmem [shape: f32[64,1], index: 2, kind: input, shape index: {}]   ;;  %s4845_s3 = inlined_call_operand.vmem [shape: f32[64,64], index: 3, kind: input, shape index: {}]   ;;  %s4846_s4 = inlined_call_operand.vmem [shape: f32[64,1], index: 4, kind: input, shape index: {}]   ;;  %s4847_s5 = inlined_call_operand.vmem [shape: f32[1,64], index: 5, kind: input, shape index: {}]   ;;  %s4848_s6 = inlined_call_operand.<no memory space> [shape: f32[1,1], index: 6, kind: input, shape index: {}]   ;;  %s4849_s7 = inlined_call_operand.hbm [shape: f32[1,128], index: 7, kind: output, shape index: {}]  }
   0x1   :  { %v12_v0 = vstv %s4848_s6 }
   0x2   :  { %13 = vst [vmem:[#allocation2] sm:$0x1] %v12_v0 }
   0x3   :  { %v29_v1 = vld [vmem:[%s4842_s0] sm:$0xff]  ;;  %v30_v2 = vld [vmem:[%s4842_s0 + $0x8] sm:$0xff]  ;;  %vm101_vm0 = vcmask 121856   ;;  %v31_v3 = vld [vmem:[%s4842_s0 + $0x10] sm:$0xff] }
   0x4   :  { %v127_v4 = vsel %vm101_vm0, %v29_v1, 0  ;;  %v130_v5 = vsel %vm101_vm0, %v30_v2, 0  ;;  %v32_v6 = vld [vmem:[%s4842_s0 + $0x18] sm:$0xff]  ;;  %v133_v7 = vsel %vm101_vm0, %v31_v3, 0  ;;  %v33_v8 = vld [vmem:[%s4842_s0 + $0x20] sm:$0xff]  ;;  %v34_v9 = vld [vmem:[%s4842_s0 + $0x28] sm:$0xff] }
   0x5   :  { %v175_v10 = vand.u32 4294901760, %v127_v4  ;;  %v178_v11 = vand.u32 4294901760, %v130_v5  ;;  %v136_v12 = vsel %vm101_vm0, %v32_v6, 0  ;;  %v181_v13 = vand.u32 4294901760, %v133_v7  ;;  %v35_v27 = vld [vmem:[%s4842_s0 + $0x30] sm:$0xff]  ;;  %v36_v28 = vld [vmem:[%s4842_s0 + $0x38] sm:$0xff] }
   0x6   :  { %v184_v14 = vand.u32 4294901760, %v136_v12  ;;  %v139_v15 = vsel %vm101_vm0, %v33_v8, 0  ;;  %v142_v16 = vsel %vm101_vm0, %v34_v9, 0 }
   0x7   :  { %v4026_v17 = vpack.c.bf16 %v178_v11, %v175_v10  ;;  %v4028_v18 = vsub.f32 %v127_v4, %v175_v10  ;;  %v4030_v19 = vsub.f32 %v130_v5, %v178_v11  ;;  %v4032_v20 = vsub.f32 %v133_v7, %v181_v13 }
   0x8   :  { %v4034_v21 = vpack.c.bf16 %v184_v14, %v181_v13  ;;  %v4036_v22 = vsub.f32 %v136_v12, %v184_v14  ;;  %v187_v24 = vand.u32 4294901760, %v139_v15  ;;  %v190_v25 = vand.u32 4294901760, %v142_v16 }
   0x9   :  { %v3521_v23 = vpack.c.bf16 %v4030_v19, %v4028_v18  ;;  %3458 = vmatprep.subr.bf16.mxu1 %v4026_v17 }
   0xa   :  { %v3525_v26 = vpack.c.bf16 %v4036_v22, %v4032_v20  ;;  %3460 = vmatpush3.bf16.xpose.msra.mxu1 %v4026_v17 }
   0xb   :  { %3522 = vmatprep.subr.bf16.mxu0 %v3521_v23  ;;  %3462 = vmatprep.subr.bf16.mxu1 %v4034_v21 }
   0xc   :  { %3524 = vmatpush3.bf16.xpose.msra.mxu0 %v3521_v23 }
   0xd   :  { %14 = vsyncpa [#allocation4], 0  ;;  %3526 = vmatprep.subr.bf16.mxu0 %v3525_v26  ;;  %v4051_v29 = vsub.f32 %v139_v15, %v187_v24  ;;  %v4053_v30 = vsub.f32 %v142_v16, %v190_v25  ;;  %v145_v31 = vsel %vm101_vm0, %v35_v27, 0  ;;  %v148_v32 = vsel %vm101_vm0, %v36_v28, 0  ;;  %v45_v33 = vld [vmem:[%s4843_s1] sm:$0xff]  ;;  %v38_v40 = vld [vmem:[%s4842_s0 + $0x48] sm:$0xff] }
   0xe   :  { %v4060_v34 = vpack.c.bf16 %v190_v25, %v187_v24  ;;  %v193_v36 = vand.u32 4294901760, %v145_v31  ;;  %v196_v37 = vand.u32 4294901760, %v148_v32  ;;  %v103_v38 = vsel %vm101_vm0, %v45_v33, 0  ;;  %v37_v39 = vld [vmem:[%s4842_s0 + $0x40] sm:$0xff]  ;;  %v39_v54 = vld [vmem:[%s4842_s0 + $0x50] sm:$0xff]  ;;  %v40_v55 = vld [vmem:[%s4842_s0 + $0x58] sm:$0xff] }
   0xf   :  { %v3529_v35 = vpack.c.bf16 %v4053_v30, %v4051_v29  ;;  %v4072_v41 = vand.u32 4294901760, %v103_v38  ;;  %v151_v45 = vsel %vm101_vm0, %v37_v39, 0  ;;  %v154_v46 = vsel %vm101_vm0, %v38_v40, 0  ;;  %v41_v12 = vld [vmem:[%s4842_s0 + $0x60] sm:$0xff]  ;;  %v42_v13 = vld [vmem:[%s4842_s0 + $0x68] sm:$0xff] }
  0x10   :  { %v4075_v42 = vsub.f32 %v145_v31, %v193_v36  ;;  %v4077_v43 = vsub.f32 %v148_v32, %v196_v37  ;;  %v4084_v47 = vpack.c.bf16 %v196_v37, %v193_v36  ;;  %v199_v49 = vand.u32 4294901760, %v151_v45  ;;  %v43_v36 = vld [vmem:[%s4842_s0 + $0x70] sm:$0xff]  ;;  %v44_v37 = vld [vmem:[%s4842_s0 + $0x78] sm:$0xff] }
  0x11   :  { %v4080_v44 = vsub.f32 %v103_v38, %v4072_v41  ;;  %v202_v50 = vand.u32 4294901760, %v154_v46  ;;  %v338_v52 = vand.u32 4294901760, %v4028_v18  ;;  %v345_v53 = vand.u32 4294901760, %v4030_v19 }
  0x12   :  { %3464 = vmatpush3.bf16.xpose.msra.mxu1 %v4034_v21  ;;  %v3533_v48 = vpack.c.bf16 %v4077_v43, %v4075_v42  ;;  %v352_v58 = vand.u32 4294901760, %v4032_v20  ;;  %v359_v59 = vand.u32 4294901760, %v4036_v22  ;;  %v4111_v60 = vsub.f32 %v151_v45, %v199_v49 }
  0x13   :  { %3466 = vmatprep.subr.bf16.mxu1 %v4060_v34  ;;  %3031 = vmatprep.mubr.f32.mxu0 %v4080_v44  ;;  %v4856_v51 = vand.u32 4294901760, %v4080_v44  ;;  %v4107_v57 = vpack.c.bf16 %v345_v53, %v338_v52  ;;  %v4113_v61 = vsub.f32 %v154_v46, %v202_v50  ;;  %v157_v63 = vsel %vm101_vm0, %v39_v54, 0 }
  0x14   :  { %3528 = vmatpush3.bf16.xpose.msra.mxu0 %v3525_v26  ;;  %v160_v0 = vsel %vm101_vm0, %v40_v55, 0  ;;  %v4121_v1 = vpack.c.bf16 %v359_v59, %v352_v58  ;;  %v4123_v2 = vpack.c.bf16 %v202_v50, %v199_v49  ;;  %v366_v3 = vand.u32 4294901760, %v4051_v29  ;;  %v46_v49 = vld [vmem:[%s4843_s1 + $0x8] sm:$0xff] }
  0x15   :  { %3530 = vmatprep.subr.bf16.mxu0 %v3529_v35  ;;  %v258_v56 = vsub.f32 %v4080_v44, %v4856_v51  ;;  %v373_v4 = vand.u32 4294901760, %v4053_v30  ;;  %v380_v5 = vand.u32 4294901760, %v4075_v42  ;;  %v387_v6 = vand.u32 4294901760, %v4077_v43 }
  0x16   :  { %v3537_v7 = vpack.c.bf16 %v4113_v61, %v4111_v60  ;;  %v205_v8 = vand.u32 4294901760, %v157_v63  ;;  %v208_v9 = vand.u32 4294901760, %v160_v0  ;;  %v4860_v14 = vand.u32 4294901760, %v4111_v60 }
  0x17   :  { %v259_v62 = vand.u32 4294901760, %v258_v56  ;;  %v4135_v10 = vpack.c.bf16 %v373_v4, %v366_v3  ;;  %v4142_v11 = vpack.c.bf16 %v387_v6, %v380_v5  ;;  %v4859_v15 = vand.u32 4294901760, %v4113_v61  ;;  %v47_v56 = vld [vmem:[%s4843_s1 + $0x10] sm:$0xff] }
  0x18   :  { %v4153_v16 = vsub.f32 %v157_v63, %v205_v8  ;;  %v4155_v23 = vsub.f32 %v160_v0, %v208_v9  ;;  %v163_v25 = vsel %vm101_vm0, %v41_v12, 0  ;;  %v166_v26 = vsel %vm101_vm0, %v42_v13, 0 }
  0x19   :  { %2943 = vmatprep.mubr.f32.mxu1 %v259_v62  ;;  %v4161_v24 = vpack.c.bf16 %v4859_v15, %v4860_v14  ;;  %v4165_v27 = vpack.c.bf16 %v208_v9, %v205_v8  ;;  %v211_v31 = vand.u32 4294901760, %v163_v25  ;;  %v214_v32 = vand.u32 4294901760, %v166_v26 }
  0x1a   :  { %3468 = vmatpush3.bf16.xpose.msra.mxu1 %v4060_v34  ;;  %v3541_v28 = vpack.c.bf16 %v4155_v23, %v4153_v16  ;;  %v4855_v33 = vand.u32 4294901760, %v4153_v16  ;;  %v169_v45 = vsel %vm101_vm0, %v43_v36, 0  ;;  %v172_v46 = vsel %vm101_vm0, %v44_v37, 0 }
  0x1b   :  { %3470 = vmatprep.subr.bf16.mxu1 %v4084_v47  ;;  %v4185_v39 = vsub.f32 %v163_v25, %v211_v31  ;;  %v4187_v40 = vsub.f32 %v166_v26, %v214_v32  ;;  %v217_v54 = vand.u32 4294901760, %v169_v45  ;;  %v220_v55 = vand.u32 4294901760, %v172_v46  ;;  %v49_v26 = vld [vmem:[%s4843_s1 + $0x20] sm:$0xff] }
  0x1c   :  { %3532 = vmatpush3.bf16.xpose.msra.mxu0 %v3529_v35  ;;  %v4852_v35 = vand.u32 4294901760, %v4155_v23  ;;  %v106_v0 = vsel %vm101_vm0, %v46_v49, 0  ;;  %v109_v13 = vsel %vm101_vm0, %v47_v56, 0  ;;  %v346_v36 = vsub.f32 %v4030_v19, %v345_v53  ;;  %v50_v49 = vld [vmem:[%s4843_s1 + $0x28] sm:$0xff] }
  0x1d   :  { %3534 = vmatprep.subr.bf16.mxu0 %v3533_v48  ;;  %v3545_v50 = vpack.c.bf16 %v4187_v40, %v4185_v39  ;;  %v4851_v62 = vand.u32 4294901760, %v4185_v39  ;;  %v4850_v63 = vand.u32 4294901760, %v4187_v40  ;;  %v4215_v9 = vsub.f32 %v169_v45, %v217_v54 }
  0x1e   :  { %v4183_v38 = vpack.c.bf16 %v4852_v35, %v4855_v33  ;;  %v4217_v12 = vsub.f32 %v172_v46, %v220_v55  ;;  %v4220_v25 = vand.u32 4294901760, %v106_v0  ;;  %v4234_v37 = vand.u32 4294901760, %v109_v13 }
  0x1f   :  { %v4213_v8 = vpack.c.bf16 %v4850_v63, %v4851_v62  ;;  %v115_v46 = vsel %vm101_vm0, %v49_v26, 0  ;;  %v4854_v19 = vand.u32 4294901760, %v4215_v9  ;;  %v347_v56 = vand.u32 4294901760, %v346_v36 }
  0x20   :  { %v3549_v45 = vpack.c.bf16 %v4217_v12, %v4215_v9  ;;  %v4251_v53 = vsub.f32 %v106_v0, %v4220_v25  ;;  %v4257_v26 = vand.u32 4294901760, %v115_v46  ;;  %v118_v63 = vsel %vm101_vm0, %v50_v49, 0 }
  0x21   :  { %v4275_v49 = vand.u32 4294901760, %v118_v63  ;;  %vm1180_vm1 = vcmask 523264   ;;  %vm3956_vm2 = vmmov 0  }
  0x22   :  { %3472 = vmatpush3.bf16.xpose.msra.mxu1 %v4084_v47 }
  0x23   :  { %3474 = vmatprep.subr.bf16.mxu1 %v4123_v2 }
  0x24   :  { %3536 = vmatpush3.bf16.xpose.msra.mxu0 %v3533_v48  ;;  %v4191_v48 = vpack.c.bf16 %v214_v32, %v211_v31  ;;  %v339_v32 = vsub.f32 %v4028_v18, %v338_v52  ;;  %v51_v18 = vld [vmem:[%s4843_s1 + $0x30] sm:$0xff]  ;;  %v4853_v52 = vand.u32 4294901760, %v4217_v12 }
  0x25   :  { %3538 = vmatprep.subr.bf16.mxu0 %v3537_v7  ;;  %v121_v0 = vsel %vm101_vm0, %v51_v18, 0  ;;  %v360_v18 = vsub.f32 %v4036_v22, %v359_v59 }
  0x26   :  { %v4264_v62 = vpack.c.bf16 %v4853_v52, %v4854_v19  ;;  %v353_v52 = vsub.f32 %v4032_v20, %v352_v58  ;;  %v4284_v19 = vsub.f32 %v115_v46, %v4257_v26  ;;  %v4286_v33 = vand.u32 4294901760, %v121_v0 }
  0x27   :  { %v4299_v58 = vsub.f32 %v118_v63, %v4275_v49 }
  0x28   :  { %v4861_v22 = vand.u32 4294901760, %v4284_v19  ;;  %v354_v46 = vand.u32 4294901760, %v353_v52 }
  0x29   :  { %v307_v15 = vand.u32 4294901760, %v4299_v58 }
  0x2a   :  { %3476 = vmatpush3.bf16.xpose.msra.mxu1 %v4123_v2  ;;  %v298_v14 = vsub.f32 %v4284_v19, %v4861_v22 }
  0x2b   :  { %3478 = vmatprep.subr.bf16.mxu1 %v4165_v27  ;;  %v308_v22 = vsub.f32 %v4299_v58, %v307_v15 }
  0x2c   :  { %3540 = vmatpush3.bf16.xpose.msra.mxu0 %v3537_v7  ;;  %v48_v7 = vld [vmem:[%s4843_s1 + $0x18] sm:$0xff] }
  0x2d   :  { %3542 = vmatprep.subr.bf16.mxu0 %v3541_v28  ;;  %v112_v31 = vsel %vm101_vm0, %v48_v7, 0  ;;  %v4255_v7 = vsub.f32 %v109_v13, %v4234_v37  ;;  %v4857_v13 = vand.u32 4294901760, %v4251_v53 }
  0x2f   :  { %v4858_v36 = vand.u32 4294901760, %v4255_v7  ;;  %v268_v51 = vsub.f32 %v4251_v53, %v4857_v13 }
  0x31   :  { %v278_v20 = vsub.f32 %v4255_v7, %v4858_v36  ;;  %v269_v13 = vand.u32 4294901760, %v268_v51  ;;  %v367_v51 = vsub.f32 %v4051_v29, %v366_v3  ;;  %v309_v3 = vand.u32 4294901760, %v308_v22 }
  0x32   :  { %3480 = vmatpush3.bf16.xpose.msra.mxu1 %v4165_v27 }
  0x33   :  { %3482 = vmatprep.subr.bf16.mxu1 %v4191_v48  ;;  %v279_v63 = vand.u32 4294901760, %v278_v20  ;;  %v368_v29 = vand.u32 4294901760, %v367_v51  ;;  %v4865_v51 = vand.u32 4294901760, %v4080_v44 }
  0x34   :  { %3544 = vmatpush3.bf16.xpose.msra.mxu0 %v3541_v28  ;;  %v4225_v28 = vpack.c.bf16 %v220_v55, %v217_v54  ;;  %v4243_v54 = vand.u32 4294901760, %v112_v31  ;;  %v340_v55 = vand.u32 4294901760, %v339_v32 }
  0x35   :  { %3546 = vmatprep.subr.bf16.mxu0 %v3545_v50 }
  0x36   :  { %v4272_v32 = vsub.f32 %v112_v31, %v4243_v54  ;;  %v3489_v35 = vpack.c.bf16 %v347_v56, %v340_v55  ;;  %v361_v56 = vand.u32 4294901760, %v360_v18  ;;  %v374_v18 = vsub.f32 %v4053_v30, %v373_v4 }
  0x38   :  { %v4862_v55 = vand.u32 4294901760, %v4272_v32  ;;  %v375_v30 = vand.u32 4294901760, %v374_v18 }
  0x3a   :  { %3484 = vmatpush3.bf16.xpose.msra.mxu1 %v4191_v48  ;;  %v288_v36 = vsub.f32 %v4272_v32, %v4862_v55 }
  0x3b   :  { %3486 = vmatprep.subr.bf16.mxu1 %v4225_v28 }
  0x3c   :  { %3548 = vmatpush3.bf16.xpose.msra.mxu0 %v3545_v50  ;;  %v52_v50 = vld [vmem:[%s4843_s1 + $0x38] sm:$0xff]  ;;  %v289_v20 = vand.u32 4294901760, %v288_v36  ;;  %v388_v36 = vsub.f32 %v4077_v43, %v387_v6  ;;  %v4863_v43 = vand.u32 4294901760, %v4111_v60  ;;  %v4864_v6 = vand.u32 4294901760, %v4113_v61 }
  0x3d   :  { %3550 = vmatprep.subr.bf16.mxu0 %v3549_v45  ;;  %v124_v31 = vsel %vm101_vm0, %v52_v50, 0  ;;  %v4304_v50 = vsub.f32 %v121_v0, %v4286_v33  ;;  %v3493_v0 = vpack.c.bf16 %v361_v56, %v354_v46 }
  0x3e   :  { %v4301_v59 = vand.u32 4294901760, %v124_v31 }
  0x3f   :  { %v317_v52 = vand.u32 4294901760, %v4304_v50 }
  0x41   :  { %v318_v46 = vsub.f32 %v4304_v50, %v317_v52 }
  0x42   :  { %3488 = vmatpush3.bf16.xpose.msra.mxu1 %v4225_v28 }
  0x43   :  { %3490 = vmatprep.subr.bf16.mxu1 %v3489_v35 }
  0x44   :  { %3552 = vmatpush3.bf16.xpose.msra.mxu0 %v3549_v45  ;;  %v4316_v45 = vsub.f32 %v124_v31, %v4301_v59  ;;  %v299_v31 = vand.u32 4294901760, %v298_v14  ;;  %v319_v14 = vand.u32 4294901760, %v318_v46  ;;  %v4866_v46 = vand.u32 4294901760, %v4153_v16 }
  0x45   :  { %3554 = vmatprep.subr.bf16.mxu0 %v4026_v17 }
  0x46   :  { %v327_v55 = vand.u32 4294901760, %v4316_v45 }
  0x48   :  { %v328_v4 = vsub.f32 %v4316_v45, %v327_v55 }
  0x49   :  { %2944 = vmatmul.mubr.f32.vlgmr.msra.gmra.mrb[0].mxu1 %v269_v13  ;;  %v381_v13 = vsub.f32 %v4075_v42, %v380_v5  ;;  %v395_v5 = vsub.f32 %v4111_v60, %v4863_v43  ;;  %v409_v60 = vsub.f32 %v4153_v16, %v4866_v46 }
  0x4a   :  { %3492 = vmatpush3.bf16.xpose.msra.mxu1 %v3489_v35  ;;  %2946 = vmatprep.mubr.f32.mxu1 %v279_v63  ;;  %v3497_v35 = vpack.c.bf16 %v375_v30, %v368_v29  ;;  %v329_v22 = vand.u32 4294901760, %v328_v4  ;;  %v389_v63 = vand.u32 4294901760, %v388_v36  ;;  %v4867_v29 = vand.u32 4294901760, %v4155_v23 }
  0x4b   :  { %3032 = vmatmul.mubr.f32.vlgmr.msra.gmra.mrb[0].mxu0 %v4251_v53  ;;  %3494 = vmatprep.subr.bf16.mxu1 %v3493_v0  ;;  %v382_v56 = vand.u32 4294901760, %v381_v13  ;;  %v396_v18 = vand.u32 4294901760, %v395_v5  ;;  %v410_v44 = vand.u32 4294901760, %v409_v60  ;;  %v4868_v4 = vand.u32 4294901760, %v4185_v39 }
  0x4c   :  { %3556 = vmatpush3.bf16.xpose.msra.mxu0 %v4026_v17  ;;  %3034 = vmatprep.mubr.f32.mxu0 %v4255_v7  ;;  %v4874_v5 = vand.u32 4294901760, %v4272_v32 }
  0x4d   :  { %3558 = vmatprep.subr.bf16.mxu0 %v4034_v21  ;;  %2947 = vmatmul.mubr.f32.gmra.mrb[2].mxu1 %v289_v20  ;;  %v3501_v42 = vpack.c.bf16 %v389_v63, %v382_v56  ;;  %v4871_v63 = vand.u32 4294901760, %v4217_v12 }
  0x4e   :  { %2949 = vmatprep.mubr.f32.mxu1 %v299_v31 }
  0x4f   :  { %3035 = vmatmul.mubr.f32.gmra.mrb[2].mxu0 %v4272_v32  ;;  %v58_v32 = vld [vmem:[%s4844_s2 + $0x28] sm:$0xff] }
  0x50   :  { %3037 = vmatprep.mubr.f32.mxu0 %v4284_v19 }
  0x51   :  { %2950 = vmatmul.mubr.f32.gmra.mrb[4].mxu1 %v309_v3 }
  0x52   :  { %3496 = vmatpush3.bf16.xpose.msra.mxu1 %v3493_v0  ;;  %2952 = vmatprep.mubr.f32.mxu1 %v319_v14  ;;  %v402_v0 = vsub.f32 %v4113_v61, %v4864_v6  ;;  %v416_v61 = vsub.f32 %v4155_v23, %v4867_v29  ;;  %v423_v14 = vsub.f32 %v4185_v39, %v4868_v4  ;;  %v4875_v6 = vand.u32 4294901760, %v4284_v19  ;;  %v54_v19 = vld [vmem:[%s4844_s2 + $0x8] sm:$0xff] }
  0x53   :  { %3038 = vmatmul.mubr.f32.gmra.mrb[4].mxu0 %v4299_v58  ;;  %3498 = vmatprep.subr.bf16.mxu1 %v3497_v35  ;;  %v444_v39 = vsub.f32 %v4217_v12, %v4871_v63  ;;  %v4873_v12 = vand.u32 4294901760, %v4255_v7  ;;  %v57_v7 = vld [vmem:[%s4844_s2 + $0x20] sm:$0xff] }
  0x54   :  { %3560 = vmatpush3.bf16.xpose.msra.mxu0 %v4034_v21  ;;  %3040 = vmatprep.mubr.f32.mxu0 %v4304_v50  ;;  %v403_v20 = vand.u32 4294901760, %v402_v0  ;;  %v417_v30 = vand.u32 4294901760, %v416_v61  ;;  %v424_v23 = vand.u32 4294901760, %v423_v14  ;;  %v1132_v58 = vld [vmem:[%s4846_s4] sm:$0xff]  ;;  %v1133_v50 = vld [vmem:[%s4846_s4 + $0x8] sm:$0xff] }
  0x55   :  { %3562 = vmatprep.subr.bf16.mxu0 %v4060_v34  ;;  %2953 = vmatmul.mubr.f32.gmra.mrb[6].mxu1 %v329_v22  ;;  %v4870_v22 = vand.u32 4294901760, %v4215_v9  ;;  %v1137_v0 = vld [vmem:[%s4846_s4 + $0x28] sm:$0xff]  ;;  %v1128_v14 = vld [vmem:[%s4845_s3 + $0x20] sm:$0xff] }
  0x56   :  { %2987 = vmatprep.mubr.f32.mxu1 %v4072_v41  ;;  %v3505_v31 = vpack.c.bf16 %v403_v20, %v396_v18  ;;  %v3509_v3 = vpack.c.bf16 %v417_v30, %v410_v44  ;;  %v2052_v18 = vld [vmem:[#allocation2] sm:$0x1]  ;;  %v1126_v20 = vld [vmem:[%s4845_s3 + $0x10] sm:$0xff] }
  0x57   :  { %3041 = vmatmul.mubr.f32.gmra.mrb[6].mxu0 %v4316_v45  ;;  %v437_v56 = vsub.f32 %v4215_v9, %v4870_v22  ;;  %v4872_v9 = vand.u32 4294901760, %v4251_v53  ;;  %v56_v53 = vld [vmem:[%s4844_s2 + $0x18] sm:$0xff]  ;;  %v1136_v45 = vld [vmem:[%s4846_s4 + $0x20] sm:$0xff]  ;;  %v1188_v29 = vsel %vm1180_vm1, %v1126_v20, 0  ;;  %v1129_v22 = vld [vmem:[%s4845_s3 + $0x28] sm:$0xff] }
  0x58   :  { %3075 = vmatprep.mubr.f32.mxu0 %v4865_v51  ;;  %v1138_v51 = vld [vmem:[%s4846_s4 + $0x30] sm:$0xff] }
  0x5a   :  { %3500 = vmatpush3.bf16.xpose.msra.mxu1 %v3497_v35  ;;  %v4869_v35 = vand.u32 4294901760, %v4187_v40 }
  0x5b   :  { %3502 = vmatprep.subr.bf16.mxu1 %v3501_v42 }
  0x5c   :  { %3564 = vmatpush3.bf16.xpose.msra.mxu0 %v4060_v34  ;;  %v430_v16 = vsub.f32 %v4187_v40, %v4869_v35  ;;  %v438_v40 = vand.u32 4294901760, %v437_v56 }
  0x5d   :  { %3566 = vmatprep.subr.bf16.mxu0 %v4084_v47 }
  0x5e   :  { %v431_v13 = vand.u32 4294901760, %v430_v16 }
  0x60   :  { %v3513_v36 = vpack.c.bf16 %v431_v13, %v424_v23 }
  0x62   :  { %3504 = vmatpush3.bf16.xpose.msra.mxu1 %v3501_v42  ;;  %v445_v42 = vand.u32 4294901760, %v444_v39 }
  0x63   :  { %3506 = vmatprep.subr.bf16.mxu1 %v3505_v31 }
  0x64   :  { %3568 = vmatpush3.bf16.xpose.msra.mxu0 %v4084_v47  ;;  %v3517_v43 = vpack.c.bf16 %v445_v42, %v438_v40 }
  0x65   :  { %3570 = vmatprep.subr.bf16.mxu0 %v4123_v2 }
  0x6a   :  { %3508 = vmatpush3.bf16.xpose.msra.mxu1 %v3505_v31  ;;  %v1127_v31 = vld [vmem:[%s4845_s3 + $0x18] sm:$0xff] }
  0x6b   :  { %3510 = vmatprep.subr.bf16.mxu1 %v3509_v3  ;;  %v1191_v61 = vsel %vm1180_vm1, %v1127_v31, 0 }
  0x6c   :  { %3572 = vmatpush3.bf16.xpose.msra.mxu0 %v4123_v2  ;;  %v4539_v4 = vand.u32 4294901760, %v1191_v61 }
  0x6d   :  { %3574 = vmatprep.subr.bf16.mxu0 %v4165_v27 }
  0x6e   :  { %v4553_v56 = vsub.f32 %v1191_v61, %v4539_v4 }
  0x72   :  { %3512 = vmatpush3.bf16.xpose.msra.mxu1 %v3509_v3  ;;  %v4537_v3 = vand.u32 4294901760, %v1188_v29 }
  0x73   :  { %3514 = vmatprep.subr.bf16.mxu1 %v3513_v36 }
  0x74   :  { %3576 = vmatpush3.bf16.xpose.msra.mxu0 %v4165_v27  ;;  %v4546_v13 = vsub.f32 %v1188_v29, %v4537_v3 }
  0x75   :  { %3578 = vmatprep.subr.bf16.mxu0 %v4191_v48 }
  0x7a   :  { %3516 = vmatpush3.bf16.xpose.msra.mxu1 %v3513_v36  ;;  %v1194_v36 = vsel %vm1180_vm1, %v1128_v14, 0 }
  0x7b   :  { %3518 = vmatprep.subr.bf16.mxu1 %v3517_v43  ;;  %v4555_v42 = vand.u32 4294901760, %v1194_v36 }
  0x7c   :  { %3580 = vmatpush3.bf16.xpose.msra.mxu0 %v4191_v48 }
  0x7d   :  { %3582 = vmatprep.subr.bf16.mxu0 %v4225_v28 }
  0x82   :  { %3520 = vmatpush3.bf16.xpose.msra.mxu1 %v3517_v43  ;;  %v1197_v43 = vsel %vm1180_vm1, %v1129_v22, 0 }
  0x84   :  { %3584 = vmatpush3.bf16.xpose.msra.mxu0 %v4225_v28 }
  0x85   :  { %3586 = vmatprep.subr.bf16.mxu0 %v4107_v57 }
  0x89   :  { %2988 = vmatmul.mubr.f32.vlgmr.msra.gmra.mrb[0].mxu1 %v4220_v25 }
  0x8a   :  { %2990 = vmatprep.mubr.f32.mxu1 %v4234_v37 }
  0x8b   :  { %3076 = vmatmul.mubr.f32.vlgmr.msra.gmra.mrb[0].mxu0 %v4872_v9 }
  0x8c   :  { %3588 = vmatpush3.bf16.xpose.msra.mxu0 %v4107_v57  ;;  %3078 = vmatprep.mubr.f32.mxu0 %v4873_v12  ;;  %v53_v57 = vld [vmem:[%s4844_s2] sm:$0xff] }
  0x8d   :  { %3590 = vmatprep.subr.bf16.mxu0 %v4121_v1  ;;  %2991 = vmatmul.mubr.f32.gmra.mrb[2].mxu1 %v4243_v54 }
  0x8e   :  { %2993 = vmatprep.mubr.f32.mxu1 %v4257_v26 }
  0x8f   :  { %3079 = vmatmul.mubr.f32.gmra.mrb[2].mxu0 %v4874_v5 }
  0x90   :  { %3081 = vmatprep.mubr.f32.mxu0 %v4875_v6 }
  0x91   :  { %2994 = vmatmul.mubr.f32.gmra.mrb[4].mxu1 %v4275_v49 }
  0x92   :  { %2996 = vmatprep.mubr.f32.mxu1 %v4286_v33 }
  0x93   :  { %3082 = vmatmul.mubr.f32.gmra.mrb[4].mxu0 %v307_v15  ;;  %v55_v15 = vld [vmem:[%s4844_s2 + $0x10] sm:$0xff] }
  0x94   :  { %3592 = vmatpush3.bf16.xpose.msra.mxu0 %v4121_v1  ;;  %3084 = vmatprep.mubr.f32.mxu0 %v317_v52  ;;  %v3954_v1 = vmov 0   ;;  %v1134_v52 = vld [vmem:[%s4846_s4 + $0x10] sm:$0xff] }
  0x95   :  { %3594 = vmatprep.subr.bf16.mxu0 %v4135_v10  ;;  %2997 = vmatmul.mubr.f32.gmra.mrb[6].mxu1 %v4301_v59 }
  0x96   :  { %3928 = vset.pattern.permute.xlu0 %v3954_v1  ;;  %3929 = vset.pattern.permute.xlu1 %v3954_v1 }
  0x97   :  { %3085 = vmatmul.mubr.f32.gmra.mrb[6].mxu0 %v327_v55  ;;  %63 = vperm.xlu0 %3928, %v53_v57   ;;  %v59_v55 = vld [vmem:[%s4844_s2 + $0x30] sm:$0xff]  ;;  %v1300_v57 = vand.u32 4294901760, %v4546_v13 }
  0x98   :  { %3119 = vmatprep.mubr.f32.mxu0 %v4072_v41  ;;  %73 = vperm.xlu1 %3929, %v55_v15   ;;  %v1130_v15 = vld [vmem:[%s4845_s3 + $0x30] sm:$0xff] }
  0x9b   :  { %68 = vperm.xlu0 %3928, %v54_v19  }
  0x9c   :  { %3596 = vmatpush3.bf16.xpose.msra.mxu0 %v4135_v10  ;;  %78 = vperm.xlu1 %3929, %v56_v53   ;;  %v60_v10 = vld [vmem:[%s4844_s2 + $0x38] sm:$0xff] }
  0x9d   :  { %3598 = vmatprep.subr.bf16.mxu0 %v4142_v11 }
  0x9f   :  { %83 = vperm.xlu0 %3928, %v57_v7  }
  0xa0   :  { %88 = vperm.xlu1 %3929, %v58_v32   ;;  %v1310_v32 = vand.u32 4294901760, %v4553_v56 }
  0xa3   :  { %93 = vperm.xlu0 %3928, %v59_v55  }
  0xa4   :  { %3600 = vmatpush3.bf16.xpose.msra.mxu0 %v4142_v11  ;;  %98 = vperm.xlu1 %3929, %v60_v10   ;;  %v1135_v11 = vld [vmem:[%s4846_s4 + $0x18] sm:$0xff] }
  0xa5   :  { %3602 = vmatprep.subr.bf16.mxu0 %v4161_v24 }
  0xa7   :  { %1142 = vperm.xlu0 %3928, %v1132_v58  }
  0xa8   :  { %1147 = vperm.xlu1 %3929, %v1133_v50  }
  0xab   :  { %1152 = vperm.xlu0 %3928, %v1134_v52   ;;  %v4568_v52 = vand.u32 4294901760, %v1197_v43 }
  0xac   :  { %3604 = vmatpush3.bf16.xpose.msra.mxu0 %v4161_v24  ;;  %1157 = vperm.xlu1 %3929, %v1135_v11   ;;  %v1139_v24 = vld [vmem:[%s4846_s4 + $0x38] sm:$0xff] }
  0xad   :  { %3606 = vmatprep.subr.bf16.mxu0 %v4183_v38  ;;  %v1131_v11 = vld [vmem:[%s4845_s3 + $0x38] sm:$0xff] }
  0xaf   :  { %1162 = vperm.xlu0 %3928, %v1136_v45  }
  0xb0   :  { %1167 = vperm.xlu1 %3929, %v1137_v0  }
  0xb3   :  { %1172 = vperm.xlu0 %3928, %v1138_v51  }
  0xb4   :  { %3608 = vmatpush3.bf16.xpose.msra.mxu0 %v4183_v38  ;;  %1177 = vperm.xlu1 %3929, %v1139_v24   ;;  %v4574_v24 = vsub.f32 %v1194_v36, %v4555_v42 }
  0xb5   :  { %3610 = vmatprep.subr.bf16.mxu0 %v4213_v8 }
  0xb6   :  { %v1320_v31 = vand.u32 4294901760, %v4574_v24 }
  0xb7   :  { %2055 = vperm.xlu0 %3928, %v2052_v18   ;;  %v1200_v18 = vsel %vm1180_vm1, %v1130_v15, 0 }
  0xbc   :  { %3612 = vmatpush3.bf16.xpose.msra.mxu0 %v4213_v8 }
  0xbd   :  { %3614 = vmatprep.subr.bf16.mxu0 %v4264_v62 }
  0xc4   :  { %3616 = vmatpush3.bf16.xpose.msra.mxu0 %v4264_v62 }
  0xc5   :  { %3618 = vmatprep.subr.bf16.mxu0 %v4026_v17 }
  0xcb   :  { %3120 = vmatmul.mubr.f32.vlgmr.msra.gmra.mrb[0].mxu0 %v4220_v25 }
  0xcc   :  { %3620 = vmatpush3.bf16.xpose.msra.mxu0 %v4026_v17  ;;  %3122 = vmatprep.mubr.f32.mxu0 %v4234_v37 }
  0xcd   :  { %3622 = vmatprep.subr.bf16.mxu0 %v4034_v21 }
  0xcf   :  { %3123 = vmatmul.mubr.f32.gmra.mrb[2].mxu0 %v4243_v54 }
  0xd0   :  { %3125 = vmatprep.mubr.f32.mxu0 %v4257_v26 }
  0xd3   :  { %3126 = vmatmul.mubr.f32.gmra.mrb[4].mxu0 %v4275_v49 }
  0xd4   :  { %3624 = vmatpush3.bf16.xpose.msra.mxu0 %v4034_v21  ;;  %3128 = vmatprep.mubr.f32.mxu0 %v4286_v33 }
  0xd5   :  { %3626 = vmatprep.subr.bf16.mxu0 %v4060_v34 }
  0xd7   :  { %3129 = vmatmul.mubr.f32.gmra.mrb[6].mxu0 %v4301_v59 }
  0xd8   :  { %3163 = vmatprep.mubr.f32.mxu0 %v4072_v41 }
  0xdc   :  { %3628 = vmatpush3.bf16.xpose.msra.mxu0 %v4060_v34 }
  0xdd   :  { %3630 = vmatprep.subr.bf16.mxu0 %v4084_v47 }
  0xe4   :  { %3632 = vmatpush3.bf16.xpose.msra.mxu0 %v4084_v47 }
  0xe5   :  { %3634 = vmatprep.subr.bf16.mxu0 %v4123_v2 }
  0xec   :  { %3636 = vmatpush3.bf16.xpose.msra.mxu0 %v4123_v2 }
  0xed   :  { %3638 = vmatprep.subr.bf16.mxu0 %v4165_v27 }
  0xf4   :  { %3640 = vmatpush3.bf16.xpose.msra.mxu0 %v4165_v27 }
  0xf5   :  { %3642 = vmatprep.subr.bf16.mxu0 %v4191_v48 }
  0xfc   :  { %3644 = vmatpush3.bf16.xpose.msra.mxu0 %v4191_v48  ;;  %v1124_v48 = vld [vmem:[%s4845_s3] sm:$0xff] }
  0xfd   :  { %3646 = vmatprep.subr.bf16.mxu0 %v4225_v28  ;;  %v1182_v62 = vsel %vm1180_vm1, %v1124_v48, 0  ;;  %v4589_v48 = vsel %vm1180_vm1, %v1131_v11, 0 }
  0xfe   :  { %v4510_v8 = vand.u32 4294901760, %v1182_v62  ;;  %v4600_v14 = vand.u32 4294901760, %v4589_v48 }
 0x100   :  { %3219 = vmatprep.mubr.f32.mxu1 %v4510_v8 }
 0x104   :  { %3648 = vmatpush3.bf16.xpose.msra.mxu0 %v4225_v28 }
 0x10b   :  { %3164 = vmatmul.mubr.f32.vlgmr.msra.gmra.mrb[0].mxu0 %v4220_v25 }
 0x10c   :  { %3166 = vmatprep.mubr.f32.mxu0 %v4234_v37 }
 0x10f   :  { %3167 = vmatmul.mubr.f32.gmra.mrb[2].mxu0 %v4243_v54  ;;  %v1125_v54 = vld [vmem:[%s4845_s3 + $0x8] sm:$0xff] }
 0x110   :  { %3169 = vmatprep.mubr.f32.mxu0 %v4257_v26 }
 0x113   :  { %3170 = vmatmul.mubr.f32.gmra.mrb[4].mxu0 %v4275_v49  ;;  %v1185_v49 = vsel %vm1180_vm1, %v1125_v54, 0  ;;  %v4594_v54 = vand.u32 4294901760, %v1200_v18 }
 0x114   :  { %3172 = vmatprep.mubr.f32.mxu0 %v4286_v33  ;;  %v4513_v33 = vsub.f32 %v1182_v62, %v4510_v8  ;;  %v4530_v46 = vand.u32 4294901760, %v1185_v49 }
 0x116   :  { %v1280_v25 = vand.u32 4294901760, %v4513_v33  ;;  %v4535_v30 = vsub.f32 %v1185_v49, %v4530_v46 }
 0x117   :  { %3173 = vmatmul.mubr.f32.gmra.mrb[6].mxu0 %v4301_v59  ;;  %v74_v26 = vpop.permute.xlu1 %73  ;;  %v64_v59 = vpop.permute.xlu0 %63 }
 0x118   :  { %v1281_v28 = vsub.f32 %v4513_v33, %v1280_v25  ;;  %v1290_v23 = vand.u32 4294901760, %v4535_v30 }
 0x11a   :  { %v1282_v37 = vand.u32 4294901760, %v1281_v28  ;;  %v4561_v6 = vsub.f32 %v4535_v30, %v1290_v23 }
 0x11b   :  { %v79_v60 = vpop.permute.xlu1 %78  ;;  %v69_v44 = vpop.permute.xlu0 %68 }
 0x11c   :  { %3191 = vmatprep.mubr.f32.mxu0 %v1282_v37  ;;  %v4592_v37 = vsub.f32 %v1197_v43, %v4568_v52  ;;  %v4607_v43 = vsub.f32 %v1200_v18, %v4594_v54 }
 0x11f   :  { %v89_v35 = vpop.permute.xlu1 %88  ;;  %v84_v16 = vpop.permute.xlu0 %83 }
 0x123   :  { %v99_v1 = vpop.permute.xlu1 %98  ;;  %v94_v55 = vpop.permute.xlu0 %93 }
 0x15c   :  { %v2989_v17 = vpop.f32.mrb[0].mxu1 }
 0x15d   :  { %v482_v21 = vpop.f32.mrb[1].mxu1  ;;  %v3817_v63 = vadd.f32 %v2989_v17, %v69_v44 }
 0x15e   :  { %v3819_v39 = vadd.f32 %v482_v21, %v64_v59 }
 0x160   :  { %v2992_v34 = vpop.f32.mrb[2].mxu1 }
 0x161   :  { %v494_v41 = vpop.f32.mrb[3].mxu1  ;;  %v3821_v9 = vadd.f32 %v2992_v34, %v79_v60 }
 0x162   :  { %v3823_v19 = vadd.f32 %v494_v41, %v74_v26  ;;  %v1292_v41 = vand.u32 4294901760, %v4561_v6 }
 0x164   :  { %v2995_v47 = vpop.f32.mrb[4].mxu1 }
 0x165   :  { %v506_v2 = vpop.f32.mrb[5].mxu1  ;;  %v3825_v53 = vadd.f32 %v2995_v47, %v89_v35  ;;  %v4581_v47 = vsub.f32 %v4546_v13, %v1300_v57 }
 0x166   :  { %v3827_v10 = vadd.f32 %v506_v2, %v84_v16 }
 0x168   :  { %v2998_v27 = vpop.f32.mrb[6].mxu1 }
 0x169   :  { %v518_v38 = vpop.f32.mrb[7].mxu1  ;;  %v3829_v58 = vadd.f32 %v2998_v27, %v99_v1 }
 0x16a   :  { %v3831_v45 = vadd.f32 %v518_v38, %v94_v55  ;;  %v4586_v38 = vsub.f32 %v4553_v56, %v1310_v32 }
 0x1de   :  { %v3165_v40 = vpop.f32.mrb[0].mxu0 }
 0x1df   :  { %v3818_v12 = vadd.f32 %v3817_v63, %v3165_v40  ;;  %v1070_v5 = vpop.f32.mrb[1].mxu0 }
 0x1e0   :  { %v3820_v7 = vadd.f32 %v3819_v39, %v1070_v5 }
 0x1e1   :  { %v1117_v50 = vmax.f32 %v3818_v12, 0.0 }
 0x1e2   :  { %v1116_v0 = vmax.f32 %v3820_v7, 0.0  ;;  %v3168_v51 = vpop.f32.mrb[2].mxu0 }
 0x1e3   :  { %v1209_v17 = vand.u32 4294901760, %v1117_v50  ;;  %v3822_v21 = vadd.f32 %v3821_v9, %v3168_v51  ;;  %v1082_v34 = vpop.f32.mrb[3].mxu0 }
 0x1e4   :  { %v1206_v2 = vand.u32 4294901760, %v1116_v0  ;;  %v3824_v27 = vadd.f32 %v3823_v19, %v1082_v34 }
 0x1e5   :  { %v1367_v62 = vsub.f32 %v1117_v50, %v1209_v17  ;;  %v1119_v28 = vmax.f32 %v3822_v21, 0.0 }
 0x1e6   :  { %v4596_v26 = vpack.c.bf16 %v1209_v17, %v1206_v2  ;;  %v1360_v49 = vsub.f32 %v1116_v0, %v1206_v2  ;;  %v1118_v59 = vmax.f32 %v3824_v27, 0.0  ;;  %v3171_v20 = vpop.f32.mrb[4].mxu0 }
 0x1e7   :  { %v1368_v60 = vand.u32 4294901760, %v1367_v62  ;;  %v1215_v29 = vand.u32 4294901760, %v1119_v28  ;;  %v3826_v61 = vadd.f32 %v3825_v53, %v3171_v20  ;;  %v1094_v44 = vpop.f32.mrb[5].mxu0 }
 0x1e8   :  { %v1361_v35 = vand.u32 4294901760, %v1360_v49  ;;  %v1212_v16 = vand.u32 4294901760, %v1118_v59  ;;  %v3828_v36 = vadd.f32 %v3827_v10, %v1094_v44  ;;  %3650 = vmatprep.subr.bf16.mxu0 %v4596_v26  ;;  %v4603_v22 = vpack.c.bf16 %v1367_v62, %v1360_v49 }
 0x1e9   :  { %v1381_v63 = vsub.f32 %v1119_v28, %v1215_v29  ;;  %v1121_v39 = vmax.f32 %v3826_v61, 0.0  ;;  %3652 = vmatpush3.bf16.msra.mxu0 %v4596_v26  ;;  %v1369_v40 = vsub.f32 %v1367_v62, %v1368_v60 }
 0x1ea   :  { %v4609_v9 = vpack.c.bf16 %v1215_v29, %v1212_v16  ;;  %v1374_v12 = vsub.f32 %v1118_v59, %v1212_v16  ;;  %v1120_v5 = vmax.f32 %v3828_v36, 0.0  ;;  %v3174_v15 = vpop.f32.mrb[6].mxu0  ;;  %v1362_v1 = vsub.f32 %v1360_v49, %v1361_v35 }
 0x1eb   :  { %v1382_v19 = vand.u32 4294901760, %v1381_v63  ;;  %v1221_v53 = vand.u32 4294901760, %v1121_v39  ;;  %v3830_v7 = vadd.f32 %v3829_v58, %v3174_v15  ;;  %v1106_v55 = vpop.f32.mrb[7].mxu0  ;;  %v1370_v10 = vand.u32 4294901760, %v1369_v40 }
 0x1ec   :  { %v1375_v50 = vand.u32 4294901760, %v1374_v12  ;;  %v1218_v11 = vand.u32 4294901760, %v1120_v5  ;;  %v3832_v0 = vadd.f32 %v3831_v45, %v1106_v55  ;;  %3654 = vmatprep.subr.bf16.mxu0 %v4609_v9  ;;  %v1363_v51 = vand.u32 4294901760, %v1362_v1 }
 0x1ed   :  { %v1395_v17 = vsub.f32 %v1121_v39, %v1221_v53  ;;  %v1123_v18 = vmax.f32 %v3830_v7, 0.0  ;;  %3656 = vmatpush3.bf16.msra.mxu0 %v4609_v9  ;;  %v1383_v21 = vsub.f32 %v1381_v63, %v1382_v19  ;;  %v4613_v34 = vpack.c.bf16 %v1381_v63, %v1374_v12 }
 0x1ee   :  { %v4615_v2 = vpack.c.bf16 %v1221_v53, %v1218_v11  ;;  %v1388_v27 = vsub.f32 %v1120_v5, %v1218_v11  ;;  %v1122_v62 = vmax.f32 %v3832_v0, 0.0  ;;  %v3665_v58 = vpack.c.bf16 %v1370_v10, %v1363_v51 }
 0x1ef   :  { %v1396_v28 = vand.u32 4294901760, %v1395_v17  ;;  %v1227_v49 = vand.u32 4294901760, %v1123_v18  ;;  %v1376_v59 = vsub.f32 %v1374_v12, %v1375_v50  ;;  %v1384_v20 = vand.u32 4294901760, %v1383_v21 }
 0x1f0   :  { %v1389_v45 = vand.u32 4294901760, %v1388_v27  ;;  %v1224_v29 = vand.u32 4294901760, %v1122_v62  ;;  %3658 = vmatprep.subr.bf16.mxu0 %v4615_v2  ;;  %3666 = vmatprep.subr.bf16.mxu1 %v3665_v58  ;;  %v4618_v61 = vpack.c.bf16 %v1395_v17, %v1388_v27  ;;  %v4620_v44 = vpack.c.bf16 %v1368_v60, %v1361_v35 }
 0x1f1   :  { %v1409_v16 = vsub.f32 %v1123_v18, %v1227_v49  ;;  %3660 = vmatpush3.bf16.msra.mxu0 %v4615_v2  ;;  %3668 = vmatpush3.bf16.msra.mxu1 %v3665_v58  ;;  %v1377_v36 = vand.u32 4294901760, %v1376_v59  ;;  %v1397_v63 = vsub.f32 %v1395_v17, %v1396_v28  ;;  %v4623_v39 = vpack.c.bf16 %v1382_v19, %v1375_v50 }
 0x1f2   :  { %v4625_v40 = vpack.c.bf16 %v1227_v49, %v1224_v29  ;;  %v1402_v12 = vsub.f32 %v1122_v62, %v1224_v29  ;;  %v1390_v5 = vsub.f32 %v1388_v27, %v1389_v45  ;;  %v4627_v15 = vpack.c.bf16 %v1396_v28, %v1389_v45 }
 0x1f3   :  { %v1410_v1 = vand.u32 4294901760, %v1409_v16  ;;  %v3669_v53 = vpack.c.bf16 %v1384_v20, %v1377_v36  ;;  %v1398_v7 = vand.u32 4294901760, %v1397_v63  ;;  %v1330_v60 = vand.u32 4294901760, %v4592_v37 }
 0x1f4   :  { %v1403_v35 = vand.u32 4294901760, %v1402_v12  ;;  %3662 = vmatprep.subr.bf16.mxu0 %v4625_v40  ;;  %v1391_v55 = vand.u32 4294901760, %v1390_v5  ;;  %v4633_v10 = vsub.f32 %v4589_v48, %v4600_v14  ;;  %v3693_v19 = vpack.c.bf16 %v1409_v16, %v1402_v12 }
 0x1f5   :  { %3670 = vmatprep.subr.bf16.mxu1 %v3669_v53  ;;  %3664 = vmatpush3.bf16.msra.mxu0 %v4625_v40  ;;  %v1302_v50 = vand.u32 4294901760, %v4581_v47  ;;  %v1411_v11 = vsub.f32 %v1409_v16, %v1410_v1  ;;  %v1321_v0 = vsub.f32 %v4574_v24, %v1320_v31  ;;  %v1340_v51 = vand.u32 4294901760, %v4607_v43 }
 0x1f6   :  { %3672 = vmatpush3.bf16.msra.mxu1 %v3669_v53  ;;  %v3673_v17 = vpack.c.bf16 %v1398_v7, %v1391_v55  ;;  %v1404_v18 = vsub.f32 %v1402_v12, %v1403_v35  ;;  %v4641_v21 = vpack.c.bf16 %v1410_v1, %v1403_v35  ;;  %v1312_v27 = vand.u32 4294901760, %v4586_v38 }
 0x1f7   :  { %v1412_v48 = vand.u32 4294901760, %v1411_v11  ;;  %v1331_v62 = vsub.f32 %v4592_v37, %v1330_v60  ;;  %v1350_v58 = vand.u32 4294901760, %v4633_v10  ;;  %v1322_v28 = vand.u32 4294901760, %v1321_v0 }
 0x1f8   :  { %3192 = vmatmul.mubr.f32.vlgmr.msra.gmra.mrb[8].mxu0 %v1292_v41  ;;  %3674 = vmatprep.subr.bf16.mxu1 %v3673_v17  ;;  %v1405_v47 = vand.u32 4294901760, %v1404_v18  ;;  %v1341_v49 = vsub.f32 %v4607_v43, %v1340_v51 }
 0x1f9   :  { %3194 = vmatprep.mubr.f32.mxu0 %v1302_v50  ;;  %v1332_v6 = vand.u32 4294901760, %v1331_v62  ;;  %v1351_v41 = vsub.f32 %v4633_v10, %v1350_v58 }
 0x1fa   :  { %3676 = vmatpush3.bf16.msra.mxu1 %v3673_v17  ;;  %v3677_v59 = vpack.c.bf16 %v1412_v48, %v1405_v47  ;;  %v1342_v38 = vand.u32 4294901760, %v1341_v49 }
 0x1fb   :  { %v1352_v20 = vand.u32 4294901760, %v1351_v41 }
 0x1fc   :  { %3195 = vmatmul.mubr.f32.gmra.mrb[10].mxu0 %v1312_v27  ;;  %3678 = vmatprep.subr.bf16.mxu1 %v3677_v59 }
 0x1fd   :  { %3197 = vmatprep.mubr.f32.mxu0 %v1322_v28 }
 0x1fe   :  { %3680 = vmatpush3.bf16.msra.mxu1 %v3677_v59 }
 0x1ff   :  { %3682 = vmatprep.subr.bf16.mxu1 %v4603_v22 }
 0x200   :  { %3198 = vmatmul.mubr.f32.gmra.mrb[12].mxu0 %v1332_v6 }
 0x201   :  { %3220 = vmatmul.mubr.f32.vlgmr.msra.gmra.mrb[8].mxu1 %v4530_v46  ;;  %3200 = vmatprep.mubr.f32.mxu0 %v1342_v38 }
 0x202   :  { %3684 = vmatpush3.bf16.msra.mxu1 %v4603_v22  ;;  %3222 = vmatprep.mubr.f32.mxu1 %v4537_v3 }
 0x203   :  { %3686 = vmatprep.subr.bf16.mxu1 %v4613_v34 }
 0x204   :  { %3201 = vmatmul.mubr.f32.gmra.mrb[14].mxu0 %v1352_v20 }
 0x205   :  { %3223 = vmatmul.mubr.f32.gmra.mrb[10].mxu1 %v4539_v4 }
 0x206   :  { %3688 = vmatpush3.bf16.msra.mxu1 %v4613_v34  ;;  %3225 = vmatprep.mubr.f32.mxu1 %v4555_v42 }
 0x207   :  { %3690 = vmatprep.subr.bf16.mxu1 %v4618_v61 }
 0x209   :  { %3226 = vmatmul.mubr.f32.gmra.mrb[12].mxu1 %v4568_v52 }
 0x20a   :  { %3692 = vmatpush3.bf16.msra.mxu1 %v4618_v61  ;;  %3228 = vmatprep.mubr.f32.mxu1 %v4594_v54 }
 0x20b   :  { %3694 = vmatprep.subr.bf16.mxu1 %v3693_v19 }
 0x20d   :  { %3229 = vmatmul.mubr.f32.gmra.mrb[14].mxu1 %v4600_v14 }
 0x20e   :  { %3696 = vmatpush3.bf16.msra.mxu1 %v3693_v19  ;;  %3247 = vmatprep.mubr.f32.mxu1 %v4513_v33  ;;  %v3955_v33 = vmov 0.0|0.0  }
 0x20f   :  { %3698 = vmatprep.subr.bf16.mxu1 %v4596_v26  ;;  %3745 = vmatprep.subr.bf16.mxu0 %v3955_v33 }
 0x211   :  { %3248 = vmatmul.mubr.f32.vlgmr.msra.gmra.mrb[8].mxu1 %v4535_v30 }
 0x212   :  { %3700 = vmatpush3.bf16.msra.mxu1 %v4596_v26  ;;  %3250 = vmatprep.mubr.f32.mxu1 %v4546_v13 }
 0x213   :  { %3702 = vmatprep.subr.bf16.mxu1 %v4609_v9 }
 0x215   :  { %3251 = vmatmul.mubr.f32.gmra.mrb[10].mxu1 %v4553_v56 }
 0x216   :  { %3704 = vmatpush3.bf16.msra.mxu1 %v4609_v9  ;;  %3253 = vmatprep.mubr.f32.mxu1 %v4574_v24 }
 0x217   :  { %3706 = vmatprep.subr.bf16.mxu1 %v4615_v2 }
 0x219   :  { %3254 = vmatmul.mubr.f32.gmra.mrb[12].mxu1 %v4592_v37 }
 0x21a   :  { %3708 = vmatpush3.bf16.msra.mxu1 %v4615_v2  ;;  %3256 = vmatprep.mubr.f32.mxu1 %v4607_v43 }
 0x21b   :  { %3710 = vmatprep.subr.bf16.mxu1 %v4625_v40 }
 0x21d   :  { %3257 = vmatmul.mubr.f32.gmra.mrb[14].mxu1 %v4633_v10 }
 0x21e   :  { %3712 = vmatpush3.bf16.msra.mxu1 %v4625_v40  ;;  %3275 = vmatprep.mubr.f32.mxu1 %v1280_v25 }
 0x21f   :  { %3714 = vmatprep.subr.bf16.mxu1 %v4620_v44 }
 0x221   :  { %3276 = vmatmul.mubr.f32.vlgmr.msra.gmra.mrb[8].mxu1 %v1290_v23 }
 0x222   :  { %3716 = vmatpush3.bf16.msra.mxu1 %v4620_v44  ;;  %3278 = vmatprep.mubr.f32.mxu1 %v1300_v57  ;;  %v1148_v57 = vpop.permute.xlu1 %1147 }
 0x223   :  { %3718 = vmatprep.subr.bf16.mxu1 %v4623_v39 }
 0x225   :  { %3279 = vmatmul.mubr.f32.gmra.mrb[10].mxu1 %v1310_v32  ;;  %v1143_v32 = vpop.permute.xlu0 %1142 }
 0x226   :  { %3720 = vmatpush3.bf16.msra.mxu1 %v4623_v39  ;;  %3281 = vmatprep.mubr.f32.mxu1 %v1320_v31  ;;  %v1158_v37 = vpop.permute.xlu1 %1157 }
 0x227   :  { %3722 = vmatprep.subr.bf16.mxu1 %v4627_v15 }
 0x229   :  { %3282 = vmatmul.mubr.f32.gmra.mrb[12].mxu1 %v1330_v60 }
 0x22a   :  { %3724 = vmatpush3.bf16.msra.mxu1 %v4627_v15  ;;  %3284 = vmatprep.mubr.f32.mxu1 %v1340_v51  ;;  %v1168_v34 = vpop.permute.xlu1 %1167 }
 0x22b   :  { %3726 = vmatprep.subr.bf16.mxu1 %v4641_v21 }
 0x22d   :  { %3285 = vmatmul.mubr.f32.gmra.mrb[14].mxu1 %v1350_v58 }
 0x22e   :  { %3728 = vmatpush3.bf16.msra.mxu1 %v4641_v21  ;;  %3303 = vmatprep.mubr.f32.mxu1 %v4510_v8  ;;  %v1178_v35 = vpop.permute.xlu1 %1177 }
 0x22f   :  { %3730 = vmatprep.subr.bf16.mxu1 %v4596_v26 }
 0x231   :  { %3304 = vmatmul.mubr.f32.vlgmr.msra.gmra.mrb[8].mxu1 %v4530_v46 }
 0x232   :  { %3732 = vmatpush3.bf16.msra.mxu1 %v4596_v26  ;;  %3306 = vmatprep.mubr.f32.mxu1 %v4537_v3 }
 0x233   :  { %3734 = vmatprep.subr.bf16.mxu1 %v4609_v9 }
 0x235   :  { %3307 = vmatmul.mubr.f32.gmra.mrb[10].mxu1 %v4539_v4 }
 0x236   :  { %3736 = vmatpush3.bf16.msra.mxu1 %v4609_v9  ;;  %3309 = vmatprep.mubr.f32.mxu1 %v4555_v42 }
 0x237   :  { %3738 = vmatprep.subr.bf16.mxu1 %v4615_v2 }
 0x239   :  { %3310 = vmatmul.mubr.f32.gmra.mrb[12].mxu1 %v4568_v52 }
 0x23a   :  { %3740 = vmatpush3.bf16.msra.mxu1 %v4615_v2  ;;  %3312 = vmatprep.mubr.f32.mxu1 %v4594_v54 }
 0x23b   :  { %3742 = vmatprep.subr.bf16.mxu1 %v4625_v40 }
 0x23d   :  { %3313 = vmatmul.mubr.f32.gmra.mrb[14].mxu1 %v4600_v14 }
 0x23e   :  { %3744 = vmatpush3.bf16.msra.mxu1 %v4625_v40  ;;  %3331 = vmatprep.mubr.f32.mxu1 %v4510_v8  ;;  %v3957_v8 = vmov 0.0  }
 0x23f   :  { %3757 = vmatprep.subr.bf16.mxu1 %v3955_v33  ;;  %3359 = vmatprep.mubr.msk.f32.mxu0 %vm3956_vm2, %v3957_v8 }
 0x241   :  { %3332 = vmatmul.mubr.f32.vlgmr.msra.gmra.mrb[8].mxu1 %v4530_v46 }
 0x242   :  { %3334 = vmatprep.mubr.f32.mxu1 %v4537_v3 }
 0x245   :  { %3335 = vmatmul.mubr.f32.gmra.mrb[10].mxu1 %v4539_v4 }
 0x246   :  { %3337 = vmatprep.mubr.f32.mxu1 %v4555_v42  ;;  %v2051_v42 = vld [vmem:[%s4847_s5] sm:$0x1]  ;;  %s3958_s5 = smov [#allocation3]  }
 0x247   :  { %s2609_s20 = sshll.u32 %s3958_s5, 4  ;;  %s2610_s20 = int_to_ptr.vmem [resolvable:$true] %s2609_s20 }
 0x248   :  { %s3930_s2 = scalar_lea.vmem %s2610_s20, 16  ;;  %s3934_s21 = scalar_lea.vmem %s2610_s20, 32 }
 0x249   :  { %3338 = vmatmul.mubr.f32.gmra.mrb[12].mxu1 %v4568_v52  ;;  %v2063_v52 = vsel %vm1180_vm1, %v2051_v42, 0  ;;  %p3931_p0 = scmp.ne.s32.totalorder %s2610_s20, %s3930_s2  ;;  %p3935_p1 = scmp.lt.s32.totalorder %s2610_s20, %s2610_s20 }
 0x24a   :  { %3340 = vmatprep.mubr.f32.mxu1 %v4594_v54  ;;  %v4739_v24 = vand.u32 4294901760, %v2063_v52  ;;  %v1153_v54 = vpop.permute.xlu0 %1152  ;;  %p3936_p2 = scmp.lt.s32.totalorder %s3934_s21, %s3930_s2 }
 0x24c   :  { %v4742_v31 = vsub.f32 %v2063_v52, %v4739_v24  ;;  %p3937_p3 = por %p3936_p2, %p3935_p1 }
 0x24d   :  { %3341 = vmatmul.mubr.f32.gmra.mrb[14].mxu1 %v4600_v14 }
 0x24e   :  { %3378 = vmatprep.mubr.msk.f32.mxu1 %vm3956_vm2, %v3957_v8  ;;  %v2140_v61 = vand.u32 4294901760, %v4742_v31  ;;  %v1163_v44 = vpop.permute.xlu0 %1162  ;;  %p3938_p4 = pnand %p3937_p3, %p3931_p0 }
 0x250   :  { %v4750_v60 = vsub.f32 %v4742_v31, %v2140_v61 }
 0x252   :  { %v1173_v48 = vpop.permute.xlu0 %1172 }
 0x2cb   :  { %v3193_v25 = vpop.f32.mrb[8].mxu0 }
 0x2cc   :  { %v1284_v46 = vpop.f32.mrb[9].mxu0  ;;  %v1295_v26 = vadd.f32 %v3193_v25, %v1148_v57 }
 0x2cd   :  { %v1285_v14 = vadd.f32 %v1284_v46, %v1143_v32 }
 0x2cf   :  { %v3196_v30 = vpop.f32.mrb[10].mxu0 }
 0x2d0   :  { %v1304_v3 = vpop.f32.mrb[11].mxu0  ;;  %v1315_v45 = vadd.f32 %v3196_v30, %v1158_v37 }
 0x2d1   :  { %v1305_v16 = vadd.f32 %v1304_v3, %v1153_v54 }
 0x2d3   :  { %v3199_v4 = vpop.f32.mrb[12].mxu0 }
 0x2d4   :  { %v1324_v23 = vpop.f32.mrb[13].mxu0  ;;  %v1335_v1 = vadd.f32 %v3199_v4, %v1168_v34 }
 0x2d5   :  { %v1325_v55 = vadd.f32 %v1324_v23, %v1163_v44 }
 0x2d7   :  { %v3202_v13 = vpop.f32.mrb[14].mxu0 }
 0x2d8   :  { %v1344_v56 = vpop.f32.mrb[15].mxu0  ;;  %v1355_v0 = vadd.f32 %v3202_v13, %v1178_v35 }
 0x2d9   :  { %v1345_v28 = vadd.f32 %v1344_v56, %v1173_v48 }
 0x314   :  { %v3333_v22 = vpop.f32.mrb[8].mxu1 }
 0x315   :  { %v3834_v43 = vadd.f32 %v3333_v22, %v1295_v26  ;;  %v1997_v9 = vpop.f32.mrb[9].mxu1 }
 0x316   :  { %v3836_v2 = vadd.f32 %v1997_v9, %v1285_v14 }
 0x317   :  { %v2044_v29 = vmax.f32 %v3834_v43, 0.0 }
 0x318   :  { %v2043_v36 = vmax.f32 %v3836_v2, 0.0  ;;  %v3336_v63 = vpop.f32.mrb[10].mxu1 }
 0x319   :  { %v2069_v39 = vand.u32 4294901760, %v2044_v29  ;;  %v3838_v40 = vadd.f32 %v3336_v63, %v1315_v45  ;;  %v2009_v12 = vpop.f32.mrb[11].mxu1 }
 0x31a   :  { %v2066_v5 = vand.u32 4294901760, %v2043_v36  ;;  %v3840_v15 = vadd.f32 %v2009_v12, %v1305_v16  ;;  %v2142_v12 = vand.u32 4294901760, %v4750_v60 }
 0x31b   :  { %v4745_v53 = vsub.f32 %v2044_v29, %v2069_v39  ;;  %v2046_v7 = vmax.f32 %v3838_v40, 0.0 }
 0x31c   :  { %v4752_v10 = vpack.c.bf16 %v2069_v39, %v2066_v5  ;;  %v4754_v19 = vsub.f32 %v2043_v36, %v2066_v5  ;;  %v2045_v50 = vmax.f32 %v3840_v15, 0.0  ;;  %v3339_v11 = vpop.f32.mrb[12].mxu1 }
 0x31d   :  { %v2158_v51 = vand.u32 4294901760, %v4745_v53  ;;  %v2075_v17 = vand.u32 4294901760, %v2046_v7  ;;  %v3842_v18 = vadd.f32 %v3339_v11, %v1335_v1  ;;  %v2021_v21 = vpop.f32.mrb[13].mxu1 }
 0x31e   :  { %v2151_v27 = vand.u32 4294901760, %v4754_v19  ;;  %v2072_v47 = vand.u32 4294901760, %v2045_v50  ;;  %v3844_v62 = vadd.f32 %v2021_v21, %v1325_v55  ;;  %3747 = vmatpush3.bf16.msra.mxu0 %v4752_v10  ;;  %v3770_v58 = vpack.c.bf16 %v4745_v53, %v4754_v19 }
 0x31f   :  { %v2159_v49 = vsub.f32 %v4745_v53, %v2158_v51  ;;  %v4762_v59 = vsub.f32 %v2046_v7, %v2075_v17  ;;  %v2048_v6 = vmax.f32 %v3842_v18, 0.0  ;;  %3748 = vmatprep.subr.bf16.mxu0 %v3955_v33  ;;  %v2058_v53 = vlaneseq }
 0x320   :  { %v2152_v41 = vsub.f32 %v4754_v19, %v2151_v27  ;;  %v4766_v38 = vpack.c.bf16 %v2075_v17, %v2072_v47  ;;  %v4768_v20 = vsub.f32 %v2045_v50, %v2072_v47  ;;  %v2047_v25 = vmax.f32 %v3844_v62, 0.0  ;;  %v3342_v46 = vpop.f32.mrb[14].mxu1 }
 0x321   :  { %v2160_v30 = vand.u32 4294901760, %v2159_v49  ;;  %v2172_v3 = vand.u32 4294901760, %v4762_v59  ;;  %v2081_v4 = vand.u32 4294901760, %v2048_v6  ;;  %v3846_v23 = vadd.f32 %v3342_v46, %v1355_v0  ;;  %v2033_v13 = vpop.f32.mrb[15].mxu1 }
 0x322   :  { %v2153_v56 = vand.u32 4294901760, %v2152_v41  ;;  %v2165_v42 = vand.u32 4294901760, %v4768_v20  ;;  %v2078_v57 = vand.u32 4294901760, %v2047_v25  ;;  %v3848_v32 = vadd.f32 %v2033_v13, %v1345_v28  ;;  %3750 = vmatpush3.bf16.msra.mxu0 %v4766_v38 }
 0x323   :  { %v2173_v52 = vsub.f32 %v4762_v59, %v2172_v3  ;;  %v2185_v37 = vsub.f32 %v2048_v6, %v2081_v4  ;;  %v2050_v54 = vmax.f32 %v3846_v23, 0.0  ;;  %3751 = vmatprep.subr.bf16.mxu0 %v3955_v33  ;;  %v3773_v26 = vpack.c.bf16 %v4762_v59, %v4768_v20 }
 0x324   :  { %v2166_v14 = vsub.f32 %v4768_v20, %v2165_v42  ;;  %v4778_v22 = vpack.c.bf16 %v2081_v4, %v2078_v57  ;;  %v2178_v43 = vsub.f32 %v2047_v25, %v2078_v57  ;;  %v2049_v9 = vmax.f32 %v3848_v32, 0.0 }
 0x325   :  { %v2174_v34 = vand.u32 4294901760, %v2173_v52  ;;  %v2186_v2 = vand.u32 4294901760, %v2185_v37  ;;  %v2087_v45 = vand.u32 4294901760, %v2050_v54  ;;  %v3758_v29 = vpack.c.bf16 %v2160_v30, %v2153_v56 }
 0x326   :  { %v2167_v44 = vand.u32 4294901760, %v2166_v14  ;;  %v2179_v16 = vand.u32 4294901760, %v2178_v43  ;;  %v2084_v36 = vand.u32 4294901760, %v2049_v9  ;;  %3753 = vmatpush3.bf16.msra.mxu0 %v4778_v22  ;;  %v3776_v63 = vpack.c.bf16 %v2185_v37, %v2178_v43 }
 0x327   :  { %v2187_v39 = vsub.f32 %v2185_v37, %v2186_v2  ;;  %v2199_v40 = vsub.f32 %v2050_v54, %v2087_v45  ;;  %3759 = vmatpush3.bf16.msra.mxu1 %v3758_v29  ;;  %3754 = vmatprep.subr.bf16.mxu0 %v3955_v33  ;;  %v3794_v5 = vpack.c.bf16 %v2158_v51, %v2151_v27 }
 0x328   :  { %v2180_v15 = vsub.f32 %v2178_v43, %v2179_v16  ;;  %v4783_v1 = vpack.c.bf16 %v2087_v45, %v2084_v36  ;;  %v2192_v7 = vsub.f32 %v2049_v9, %v2084_v36  ;;  %3760 = vmatprep.subr.bf16.mxu1 %v3955_v33  ;;  %v3761_v35 = vpack.c.bf16 %v2174_v34, %v2167_v44 }
 0x329   :  { %v2188_v55 = vand.u32 4294901760, %v2187_v39  ;;  %v2200_v50 = vand.u32 4294901760, %v2199_v40  ;;  %v3797_v11 = vpack.c.bf16 %v2172_v3, %v2165_v42  ;;  %v3800_v0 = vpack.c.bf16 %v2186_v2, %v2179_v16 }
 0x32a   :  { %v2181_v17 = vand.u32 4294901760, %v2180_v15  ;;  %v2193_v18 = vand.u32 4294901760, %v2192_v7  ;;  %3756 = vmatpush3.bf16.msra.mxu0 %v4783_v1  ;;  %v3779_v21 = vpack.c.bf16 %v2199_v40, %v2192_v7 }
 0x32b   :  { %v2201_v48 = vsub.f32 %v2199_v40, %v2200_v50  ;;  %3762 = vmatpush3.bf16.msra.mxu1 %v3761_v35 }
 0x32c   :  { %v2194_v60 = vsub.f32 %v2192_v7, %v2193_v18  ;;  %3763 = vmatprep.subr.bf16.mxu1 %v3955_v33  ;;  %v3764_v51 = vpack.c.bf16 %v2188_v55, %v2181_v17  ;;  %v3803_v27 = vpack.c.bf16 %v2200_v50, %v2193_v18 }
 0x32d   :  { %v2202_v47 = vand.u32 4294901760, %v2201_v48  ;;  %3360 = vmatmul.mubr.f32.vlgmr.msra.gmra.mrb[16].mxu0 %v2142_v12 }
 0x32e   :  { %v2195_v62 = vand.u32 4294901760, %v2194_v60 }
 0x32f   :  { %3765 = vmatpush3.bf16.msra.mxu1 %v3764_v51 }
 0x330   :  { %3766 = vmatprep.subr.bf16.mxu1 %v3955_v33  ;;  %v3767_v28 = vpack.c.bf16 %v2202_v47, %v2195_v62 }
 0x333   :  { %3768 = vmatpush3.bf16.msra.mxu1 %v3767_v28 }
 0x334   :  { %3769 = vmatprep.subr.bf16.mxu1 %v3955_v33 }
 0x336   :  { %3379 = vmatmul.mubr.f32.vlgmr.msra.gmra.mrb[16].mxu1 %v4739_v24 }
 0x337   :  { %3771 = vmatpush3.bf16.msra.mxu1 %v3770_v58  ;;  %3397 = vmatprep.mubr.msk.f32.mxu1 %vm3956_vm2, %v3957_v8 }
 0x338   :  { %3772 = vmatprep.subr.bf16.mxu1 %v3955_v33 }
 0x33b   :  { %3774 = vmatpush3.bf16.msra.mxu1 %v3773_v26 }
 0x33c   :  { %3775 = vmatprep.subr.bf16.mxu1 %v3955_v33 }
 0x33f   :  { %3777 = vmatpush3.bf16.msra.mxu1 %v3776_v63 }
 0x340   :  { %3778 = vmatprep.subr.bf16.mxu1 %v3955_v33 }
 0x343   :  { %3780 = vmatpush3.bf16.msra.mxu1 %v3779_v21 }
 0x344   :  { %3781 = vmatprep.subr.bf16.mxu1 %v3955_v33 }
 0x346   :  { %3398 = vmatmul.mubr.f32.vlgmr.msra.gmra.mrb[16].mxu1 %v4742_v31 }
 0x347   :  { %3783 = vmatpush3.bf16.msra.mxu1 %v4752_v10  ;;  %3416 = vmatprep.mubr.msk.f32.mxu1 %vm3956_vm2, %v3957_v8 }
 0x348   :  { %3784 = vmatprep.subr.bf16.mxu1 %v3955_v33 }
 0x34b   :  { %3786 = vmatpush3.bf16.msra.mxu1 %v4766_v38 }
 0x34c   :  { %3787 = vmatprep.subr.bf16.mxu1 %v3955_v33 }
 0x34f   :  { %3789 = vmatpush3.bf16.msra.mxu1 %v4778_v22 }
 0x350   :  { %3790 = vmatprep.subr.bf16.mxu1 %v3955_v33 }
 0x353   :  { %3792 = vmatpush3.bf16.msra.mxu1 %v4783_v1 }
 0x354   :  { %3793 = vmatprep.subr.bf16.mxu1 %v3955_v33 }
 0x356   :  { %3417 = vmatmul.mubr.f32.vlgmr.msra.gmra.mrb[16].mxu1 %v2140_v61 }
 0x357   :  { %3795 = vmatpush3.bf16.msra.mxu1 %v3794_v5  ;;  %3435 = vmatprep.mubr.msk.f32.mxu1 %vm3956_vm2, %v3957_v8 }
 0x358   :  { %3796 = vmatprep.subr.bf16.mxu1 %v3955_v33 }
 0x35b   :  { %3798 = vmatpush3.bf16.msra.mxu1 %v3797_v11 }
 0x35c   :  { %3799 = vmatprep.subr.bf16.mxu1 %v3955_v33 }
 0x35f   :  { %3801 = vmatpush3.bf16.msra.mxu1 %v3800_v0 }
 0x360   :  { %3802 = vmatprep.subr.bf16.mxu1 %v3955_v33 }
 0x363   :  { %3804 = vmatpush3.bf16.msra.mxu1 %v3803_v27 }
 0x364   :  { %3805 = vmatprep.subr.bf16.mxu1 %v3955_v33 }
 0x366   :  { %3436 = vmatmul.mubr.f32.vlgmr.msra.gmra.mrb[16].mxu1 %v4739_v24 }
 0x367   :  { %3807 = vmatpush3.bf16.msra.mxu1 %v4752_v10  ;;  %3454 = vmatprep.mubr.msk.f32.mxu1 %vm3956_vm2, %v3957_v8  ;;  %v2059_v10 = vshrl.u32 %v2058_v53, 7  ;;  %v2056_v8 = vpop.permute.xlu0 %2055 }
 0x368   :  { %3808 = vmatprep.subr.bf16.mxu1 %v3955_v33 }
 0x369   :  { %v2060_v19 = vsub.s32 0, %v2059_v10 }
 0x36b   :  { %3810 = vmatpush3.bf16.msra.mxu1 %v4766_v38  ;;  %v2061_v58 = vrot.slane %v2056_v8, %v2060_v19 }
 0x36c   :  { %3811 = vmatprep.subr.bf16.mxu1 %v3955_v33 }
 0x36f   :  { %3813 = vmatpush3.bf16.msra.mxu1 %v4778_v22 }
 0x370   :  { %3814 = vmatprep.subr.bf16.mxu1 %v3955_v33 }
 0x373   :  { %3816 = vmatpush3.bf16.msra.mxu1 %v4783_v1 }
 0x376   :  { %3455 = vmatmul.mubr.f32.vlgmr.msra.gmra.mrb[16].mxu1 %v4739_v24 }
 0x400   :  { %v2144_v31 = vpop.f32.mrb[16].mxu0 }
 0x401   :  { %v3361_v61 = vpop.f32.mrb[17].mxu0  ;;  %v2145_v49 = vadd.f32 %v2144_v31, %v2061_v58 }
 0x449   :  { %v2598_v59 = vpop.f32.mrb[16].mxu1 }
 0x44a   :  { %v3850_v6 = vadd.f32 %v2598_v59, %v2145_v49  ;;  %v3456_v41 = vpop.f32.mrb[17].mxu1 }
 0x44c   :  { %2602 = vst [vmem:[#allocation3] sm:$0x1] %v3850_v6 }
 0x44d   :  { %3941 = shalt.err (!%p3938_p4)
}
 0x44e   :  { %s3942_s24 = scalar_lea.hbm %s4849_s7, 16 }
 0x44f   :  { %p3943_p5 = scmp.ne.s32.totalorder %s4849_s7, %s3942_s24  ;;  %p3946_p6 = scmp.lt.u32.totalorder %s3942_s24, %s4849_s7 }
 0x451   :  { %p3948_p7 = pnand %p3946_p6, %p3943_p5 }
 0x453   :  { %3951 = shalt.err (!%p3948_p7)
}
 0x454   :  { %2612 = dma.vmem_to_hbm [thread:$0]  %s2610_s20, 16, %s4849_s7, [#allocation4]  }
 0x455   :  { %3952 = dma.done.wait [#allocation4], 16  }
 0x456   :  { %3953 = vsyncadd [#allocation4], 4294967280 }
 0x457   :  { %2616 = vsyncpa [#allocation4], 1 }

</bundles_post_ra>
